<compile_context>
chip_gen: v7x
topology: tpu7x:2x2x1
jax: 0.10.0
libtpu: 0.0.40
codegen_flags: <defaults>
</compile_context>

<pallas_src>
import functools

import jax
import jax.numpy as jnp
from jax.experimental import pallas as pl
from jax.experimental.pallas import tpu as pltpu


def _avgpool_kernel(x_ref, p_ref, o_ref, *, inv_k):
    # x_ref: (TBC, H*W)        lane-dense input slab
    # p_ref: (H*W, Hout*Wout)  resident 0/1 pooling indicator
    # o_ref: (TBC, Hout*Wout)
    x = x_ref[...]
    if not jnp.issubdtype(x.dtype, jnp.floating):
        # Integer inputs: the MXU needs a float operand here; accumulate in f32.
        x = x.astype(jnp.float32)

    # Single MXU matmul with batch folded into M; f32 accumulation.
    out = jnp.dot(x, p_ref[...], preferred_element_type=jnp.float32)
    out = out * jnp.float32(inv_k)            # exact-P + post-scale (one VPU mul)

    if not jnp.issubdtype(o_ref.dtype, jnp.floating):
        out = jnp.round(out)                  # round-to-nearest for integer outputs
    o_ref[...] = out.astype(o_ref.dtype)
    # NOTE: howo < 128 lanes -> masked output stores; bounded to ~1/(kh*kw) of traffic.


def _vmem_budget_bytes():
    """Generation-aware VMEM budget (v5e/v6e: 128 MiB physical, v7x: 64 MiB/TC)."""
    phys = 64 << 20          # conservative default = smallest (v7x)
    cores = 1
    try:
        info = pltpu.get_tpu_info()
        phys = int(getattr(info, "vmem_capacity_bytes", phys))
        for name in ("num_cores", "core_count", "num_tensorcores", "tensorcore_count"):
            v = getattr(info, name, None)
            if v:
                cores = int(v)
                break
    except Exception:
        pass
    # Leave ~25% headroom for compiler scratch / semaphores / misc.
    limit = min(96 << 20, (phys * 3) // 4)
    return limit, cores


@functools.partial(jax.jit, static_argnames=("output_size",))
def my_avg_pool2d(x, output_size):
    b, c, h_in, w_in = x.shape
    h_out, w_out = output_size
    assert h_in % h_out == 0 and w_in % w_out == 0, \
        "input spatial dims must be divisible by output_size"
    kh, kw = h_in // h_out, w_in // w_out

    bc = b * c
    hw = h_in * w_in
    howo = h_out * w_out
    itemsize = jnp.dtype(x.dtype).itemsize

    # MXU operand dtype (integer inputs are upcast in-kernel to f32).
    compute_dtype = x.dtype if jnp.issubdtype(x.dtype, jnp.floating) else jnp.float32
    p_bytes = hw * howo * jnp.dtype(compute_dtype).itemsize
    # The dense kron(A_h, A_w) matrix must stay small enough to sit resident in VMEM.
    # TODO(synk): switch to the separable (contract W with A_w, then H with A_h)
    # two-matmul form for large spatial shapes instead of the dense Kronecker P.
    assert p_bytes <= (8 << 20), \
        f"pooling matrix too large ({p_bytes} B); use the separable form"

    # ---- pooling indicator P (built once in the wrapper, resident in VMEM) ----
    r = jnp.arange(hw, dtype=jnp.int32)       # flat input index  h*W + w
    q = jnp.arange(howo, dtype=jnp.int32)     # flat output index ho*Wout + wo
    hsel = (r[:, None] // w_in) // kh == q[None, :] // w_out
    wsel = (r[:, None] % w_in) // kw == q[None, :] % w_out
    pool = (hsel & wsel).astype(compute_dtype)     # exact 0/1 in every dtype

    x_flat = x.reshape(bc, hw)                     # pure layout plumbing

    # ---- generation-aware block sizing ----------------------------------------
    vmem_limit, num_cores = _vmem_budget_bytes()
    # Residency: 2x input buffers + 2x (small) output buffers + resident P + slack.
    in_block_target = max(1 << 20, min(16 << 20, (vmem_limit - p_bytes) // 4))
    bytes_per_img = hw * itemsize
    tbc = max(1, in_block_target // bytes_per_img)
    if num_cores > 1 and bc > 1:
        # Only on multi-TensorCore chips: ensure every core gets at least one step.
        tbc = min(tbc, pl.cdiv(bc, num_cores))
    # Dtype-aware sublane alignment of the block row count (f32:8, bf16:16, int8:32).
    sub = max(8, 32 // itemsize)
    if tbc >= bc:
        tbc = bc                                   # full dim -> always a legal block
    else:
        tbc = min(bc, max(sub, (tbc // sub) * sub))
    grid = (pl.cdiv(bc, tbc),)

    kernel = functools.partial(_avgpool_kernel, inv_k=1.0 / (kh * kw))

    cost = pl.CostEstimate(
        flops=2 * bc * hw * howo,
        transcendentals=0,
        bytes_accessed=bc * hw * itemsize + bc * howo * itemsize + p_bytes,
    )

    out_flat = pl.pallas_call(
        kernel,
        out_shape=jax.ShapeDtypeStruct((bc, howo), x.dtype),
        grid_spec=pltpu.PrefetchScalarGridSpec(
            num_scalar_prefetch=0,
            grid=grid,
            in_specs=[
                pl.BlockSpec((tbc, hw), lambda i: (i, 0)),     # streamed input slab
                pl.BlockSpec((hw, howo), lambda i: (0, 0)),    # resident pooling matrix
            ],
            out_specs=pl.BlockSpec((tbc, howo), lambda i: (i, 0)),
        ),
        compiler_params=pltpu.CompilerParams(
            dimension_semantics=("parallel",),
            vmem_limit_bytes=int(vmem_limit),
        ),
        cost_estimate=cost,
    )(x_flat, pool)

    return out_flat.reshape(b, c, h_out, w_out)


def _reference(x, output_size):
    b, c, h_in, w_in = x.shape
    h_out, w_out = output_size
    kh = h_in // h_out
    kw = w_in // w_out
    return x.reshape(b, c, h_out, kh, w_out, kw).mean(axis=(3, 5))


if __name__ == "__main__":
    key = jax.random.PRNGKey(0)
    # Matches MyAvgPool2d(output_size=(4, 4)) applied to a (2, 4, 16, 16) NCHW input.
    x = jax.random.normal(key, (2, 4, 16, 16), dtype=jnp.float32)
    output_size = (4, 4)

    out = my_avg_pool2d(x, output_size)
    out = jax.block_until_ready(out)

    ref = _reference(x, output_size)
    assert out.shape == (2, 4, 4, 4), out.shape
    assert jnp.allclose(out, ref, atol=1e-5, rtol=1e-5), "mismatch vs reference"
    print("KERNEL_OK")
</pallas_src>

<mosaic_0001>
module attributes {stable_mosaic.version = 11 : i64} {
  func.func @_avgpool_kernel(%arg0: i32, %arg1: memref<8x256xf32, #tpu.memory_space<vmem>>, %arg2: memref<256x16xf32, #tpu.memory_space<vmem>>, %arg3: memref<8x16xf32, #tpu.memory_space<vmem>>) attributes {dimension_semantics = [#tpu.dimension_semantics<parallel>], iteration_bounds = array<i64: 1>, scalar_prefetch = 0 : i64, scratch_operands = 0 : i64, tpu.core_type = #tpu.core_type<tc>, window_params = [{transform_indices = @transform_0, window_bounds = array<i64: 8, 256>}, {pipeline_mode = #tpu.pipeline_mode<synchronous>, transform_indices = @transform_1, window_bounds = array<i64: 256, 16>}, {transform_indices = @transform_2, window_bounds = array<i64: 8, 16>}]} {
    %c0 = arith.constant 0 : index
    %c0_0 = arith.constant 0 : index
    %0 = vector.load %arg1[%c0, %c0_0] : memref<8x256xf32, #tpu.memory_space<vmem>>, vector<8x256xf32>
    %c0_1 = arith.constant 0 : index
    %c0_2 = arith.constant 0 : index
    %1 = vector.load %arg2[%c0_1, %c0_2] : memref<256x16xf32, #tpu.memory_space<vmem>>, vector<256x16xf32>
    %cst = arith.constant dense<0.000000e+00> : vector<8x16xf32>
    %2 = tpu.matmul %0, %1, %cst {dimension_numbers = #tpu.dot_dimension_numbers<[1], [0], [0], [1], [0, 0, 1, 1], [], []>} : vector<8x256xf32>, vector<256x16xf32>, vector<8x16xf32> -> vector<8x16xf32>
    %cst_3 = arith.constant 6.250000e-02 : f32
    %3 = vector.broadcast %cst_3 : f32 to vector<8x16xf32>
    %4 = arith.mulf %2, %3 : vector<8x16xf32>
    %c0_4 = arith.constant 0 : index
    %c0_5 = arith.constant 0 : index
    %5 = vector.load %arg3[%c0_4, %c0_5] : memref<8x16xf32, #tpu.memory_space<vmem>>, vector<8x16xf32>
    tpu.vector_store %arg3[%c0_4, %c0_5], %4 {strides = array<i32>} : memref<8x16xf32, #tpu.memory_space<vmem>>, vector<8x16xf32>,
    return
  }
  func.func @transform_0(%arg0: i32) -> (i32, i32) {
    %c0_i32 = arith.constant 0 : i32
    %c0_i32_0 = arith.constant 0 : i32
    return %arg0, %c0_i32 : i32, i32
  }
  func.func @transform_1(%arg0: i32) -> (i32, i32) {
    %c0_i32 = arith.constant 0 : i32
    %c0_i32_0 = arith.constant 0 : i32
    %c0_i32_1 = arith.constant 0 : i32
    return %c0_i32, %c0_i32_0 : i32, i32
  }
  func.func @transform_2(%arg0: i32) -> (i32, i32) {
    %c0_i32 = arith.constant 0 : i32
    %c0_i32_0 = arith.constant 0 : i32
    return %arg0, %c0_i32 : i32, i32
  }
}

</mosaic_0001>

<bundles_post_ra>
// kernel: my_avg_pool2d.1
= control target key start
LH: loop header
LB: loop body
LE: loop exit
PB: predicated region body
PF: predicated region fallthrough
CT: control target
= control target key end

     0   :  { %vm116_vm0 = vcmask 130048   ;;  %s309_s1 = inlined_call_operand.vmem [shape: f32[256,16], index: 1, kind: input, shape index: {}]   ;;  %s310_s0 = inlined_call_operand.vmem [shape: f32[8,256], index: 0, kind: input, shape index: {}]   ;;  %s311_s2 = inlined_call_operand.vmem [shape: f32[8,16], index: 2, kind: output, shape index: {}]  }
   0x1   :  { %v29_v0 = vld [vmem:[%s309_s1 + $0x80] sm:$0xff]  ;;  %v30_v1 = vld [vmem:[%s309_s1 + $0x88] sm:$0xff]  ;;  %v31_v5 = vld [vmem:[%s309_s1 + $0x90] sm:$0xff] }
   0x2   :  { %v13_v2 = vld [vmem:[%s309_s1] sm:$0xff]  ;;  %v157_v3 = vpack.c.bf16 %v30_v1, %v29_v0  ;;  %v14_v4 = vld [vmem:[%s309_s1 + $0x8] sm:$0xff]  ;;  %v32_v6 = vld [vmem:[%s309_s1 + $0x98] sm:$0xff] }
   0x3   :  { %v159_v7 = vpack.c.bf16 %v14_v4, %v13_v2  ;;  %v161_v8 = vpack.c.bf16 %v32_v6, %v31_v5  ;;  %v15_v9 = vld [vmem:[%s309_s1 + $0x10] sm:$0xff]  ;;  %v16_v10 = vld [vmem:[%s309_s1 + $0x18] sm:$0xff]  ;;  %v33_v11 = vld [vmem:[%s309_s1 + $0xa0] sm:$0xff] }
   0x4   :  { %158 = vmatprep.subr.bf16.mxu0 %v157_v3  ;;  %v34_v12 = vld [vmem:[%s309_s1 + $0xa8] sm:$0xff]  ;;  %v163_v13 = vpack.c.bf16 %v16_v10, %v15_v9  ;;  %v17_v15 = vld [vmem:[%s309_s1 + $0x20] sm:$0xff]  ;;  %v35_v17 = vld [vmem:[%s309_s1 + $0xb0] sm:$0xff] }
   0x5   :  { %160 = vmatpush3.bf16.msra.mxu0 %v159_v7  ;;  %v165_v14 = vpack.c.bf16 %v34_v12, %v33_v11  ;;  %v18_v16 = vld [vmem:[%s309_s1 + $0x28] sm:$0xff]  ;;  %v36_v18 = vld [vmem:[%s309_s1 + $0xb8] sm:$0xff]  ;;  %v19_v21 = vld [vmem:[%s309_s1 + $0x30] sm:$0xff] }
   0x6   :  { %162 = vmatprep.subr.bf16.mxu0 %v161_v8  ;;  %v167_v19 = vpack.c.bf16 %v18_v16, %v17_v15  ;;  %v169_v20 = vpack.c.bf16 %v36_v18, %v35_v17  ;;  %v20_v22 = vld [vmem:[%s309_s1 + $0x38] sm:$0xff]  ;;  %v37_v23 = vld [vmem:[%s309_s1 + $0xc0] sm:$0xff]  ;;  %v38_v24 = vld [vmem:[%s309_s1 + $0xc8] sm:$0xff] }
   0x7   :  { %v12_v25 = vld [vmem:[%s310_s0 + $0x8] sm:$0xff]  ;;  %v171_v26 = vpack.c.bf16 %v20_v22, %v19_v21  ;;  %v173_v27 = vpack.c.bf16 %v38_v24, %v37_v23  ;;  %v21_v28 = vld [vmem:[%s309_s1 + $0x40] sm:$0xff]  ;;  %v39_v30 = vld [vmem:[%s309_s1 + $0xd0] sm:$0xff] }
   0x8   :  { %109 = vmatprep.mubr.f32.mxu0 %v12_v25  ;;  %v22_v29 = vld [vmem:[%s309_s1 + $0x48] sm:$0xff]  ;;  %v40_v31 = vld [vmem:[%s309_s1 + $0xd8] sm:$0xff]  ;;  %v23_v34 = vld [vmem:[%s309_s1 + $0x50] sm:$0xff] }
   0x9   :  { %164 = vmatpush3.bf16.msra.mxu0 %v163_v13  ;;  %v175_v32 = vpack.c.bf16 %v22_v29, %v21_v28  ;;  %v177_v33 = vpack.c.bf16 %v40_v31, %v39_v30  ;;  %v24_v35 = vld [vmem:[%s309_s1 + $0x58] sm:$0xff]  ;;  %v41_v36 = vld [vmem:[%s309_s1 + $0xe0] sm:$0xff]  ;;  %v42_v37 = vld [vmem:[%s309_s1 + $0xe8] sm:$0xff] }
   0xa   :  { %166 = vmatprep.subr.bf16.mxu0 %v165_v14  ;;  %v179_v38 = vpack.c.bf16 %v24_v35, %v23_v34  ;;  %v181_v39 = vpack.c.bf16 %v42_v37, %v41_v36  ;;  %v25_v40 = vld [vmem:[%s309_s1 + $0x60] sm:$0xff]  ;;  %v26_v41 = vld [vmem:[%s309_s1 + $0x68] sm:$0xff]  ;;  %v43_v42 = vld [vmem:[%s309_s1 + $0xf0] sm:$0xff] }
   0xb   :  { %v44_v43 = vld [vmem:[%s309_s1 + $0xf8] sm:$0xff]  ;;  %v183_v44 = vpack.c.bf16 %v26_v41, %v25_v40  ;;  %v27_v46 = vld [vmem:[%s309_s1 + $0x70] sm:$0xff]  ;;  %v11_v49 = vld [vmem:[%s310_s0] sm:$0xff] }
   0xc   :  { %v185_v45 = vpack.c.bf16 %v44_v43, %v43_v42  ;;  %v28_v47 = vld [vmem:[%s309_s1 + $0x78] sm:$0xff] }
   0xd   :  { %168 = vmatpush3.bf16.msra.mxu0 %v167_v19  ;;  %v187_v48 = vpack.c.bf16 %v28_v47, %v27_v46 }
   0xe   :  { %170 = vmatprep.subr.bf16.mxu0 %v169_v20 }
  0x11   :  { %172 = vmatpush3.bf16.msra.mxu0 %v171_v26 }
  0x12   :  { %174 = vmatprep.subr.bf16.mxu0 %v173_v27 }
  0x15   :  { %176 = vmatpush3.bf16.msra.mxu0 %v175_v32 }
  0x16   :  { %178 = vmatprep.subr.bf16.mxu0 %v177_v33 }
  0x19   :  { %180 = vmatpush3.bf16.msra.mxu0 %v179_v38 }
  0x1a   :  { %182 = vmatprep.subr.bf16.mxu0 %v181_v39 }
  0x1d   :  { %184 = vmatpush3.bf16.msra.mxu0 %v183_v44 }
  0x1e   :  { %186 = vmatprep.subr.bf16.mxu0 %v185_v45 }
  0x21   :  { %188 = vmatpush3.bf16.msra.mxu0 %v187_v48 }
  0x24   :  { %110 = vmatmul.mubr.f32.vlgmr.msra.gmra.mrb[0].mxu0 %v11_v49 }
  0xf7   :  { %v154_v50 = vpop.f32.mrb[0].mxu0 }
  0xf8   :  { %v155_v51 = vpop.f32.mrb[1].mxu0 }
  0xf9   :  { %v156_v52 = vadd.f32 %v155_v51, %v154_v50 }
  0xfb   :  { %v115_v53 = vmul.f32 0.0625, %v156_v52 }
  0xfd   :  { %117 = vst.msk [vmem:[%s311_s2] sm:$0xff] %vm116_vm0, %v115_v53 }

</bundles_post_ra>
